<compile_context>
chip_gen: v5e
topology: v5e:2x2
jax: 0.10.0
libtpu: 0.0.40
codegen_flags: <defaults>
</compile_context>

<pallas_src>
import functools

import jax
import jax.numpy as jnp
from jax.experimental import pallas as pl
from jax.experimental.pallas import tpu as pltpu

GAMMA = 2.0  # module default; kernel below hardcodes gamma=2 via sig*sig


def _focal_loss_kernel(logit_ref, target_ref, out_ref):
    """Per-row focal loss sum for one (TB, N) tile. out_ref: (TB, 1)."""
    # Cast after load: inputs stay in their (possibly narrow) storage dtype in HBM.
    x = logit_ref[...].astype(jnp.float32)   # (TB, N)
    t = target_ref[...].astype(jnp.float32)  # (TB, N)

    # Stable BCE-with-logits. Algebraically identical to the PyTorch form
    #   max(-x,0) + log(exp(-max_val) + exp(-x - max_val))
    # == max(-x,0) + log(1 + exp(-|x|))            (one exp instead of two)
    e_absx = jnp.exp(-jnp.abs(x))
    bce = x - x * t + jnp.maximum(-x, 0.0) + jnp.log(1.0 + e_absx)

    # Focal weight: exp(gamma * logsigmoid(z)) == sigmoid(z)**gamma with gamma=2,
    # where z = -x * (2t - 1). Stable sigmoid with one exp + one reciprocal:
    #   sigmoid(z) = where(z >= 0, 1, exp(-|z|)) / (1 + exp(-|z|))
    z = -x * (t * 2.0 - 1.0)
    ez = jnp.exp(-jnp.abs(z))
    sig = jnp.where(z >= 0.0, 1.0, ez) * pl.reciprocal(1.0 + ez, approx=False)
    # TODO(synk): for hard {0,1} targets |z| == |x|, so `ez` could reuse `e_absx`
    # and drop one more exp; kept general because the module also accepts soft targets.

    loss = (sig * sig) * bce  # gamma = 2

    # Sum over the class axis (dim=1 of the 2-D module input).
    out_ref[...] = jnp.sum(loss, axis=1, keepdims=True)


def _choose_tile_b(B, N):
    """Pick a batch tile: multiple of 8, sized against a conservative VMEM budget
    (valid on v7x's 64 MiB VMEM with double-buffering of 2 inputs)."""
    per_input_tile_budget = 4 * 1024 * 1024          # bytes per input tile
    row_bytes = N * 4                                 # f32 working-set per row
    max_rows = max(8, (per_input_tile_budget // row_bytes) // 8 * 8)
    tile_b = min(1024, max_rows)
    b8 = ((B + 7) // 8) * 8
    tile_b = min(tile_b, b8)
    # Keep at least 2 grid steps when B allows it so v7x's two TensorCores both
    # get work (no-op on v5e/v6e with a single TC).
    if b8 > 8 and b8 <= tile_b:
        tile_b = max(8, ((b8 // 2 + 7) // 8) * 8)
    return tile_b


@functools.partial(jax.jit, static_argnames=("reduce", "tile_b"))
def focal_loss(logit, target, *, reduce=False, tile_b=None):
    """Pallas focal loss (gamma=2). For 2-D inputs returns shape (B,) (reduce=False)
    or a scalar mean (reduce=True) — same as FocalLoss(gamma=2, reduce=...)."""
    B, N = logit.shape
    if tile_b is None:
        tile_b = _choose_tile_b(B, N)

    num_tiles = pl.cdiv(B, tile_b)
    b_pad = num_tiles * tile_b
    if b_pad != B:
        # Pad with zero rows; padded output rows are sliced away below.
        logit = jnp.pad(logit, ((0, b_pad - B), (0, 0)))
        target = jnp.pad(target, ((0, b_pad - B), (0, 0)))

    out = pl.pallas_call(
        _focal_loss_kernel,
        out_shape=jax.ShapeDtypeStruct((b_pad, 1), jnp.float32),
        grid_spec=pltpu.PrefetchScalarGridSpec(
            num_scalar_prefetch=0,
            grid=(num_tiles,),
            in_specs=[
                pl.BlockSpec((tile_b, N), lambda i: (i, 0)),
                pl.BlockSpec((tile_b, N), lambda i: (i, 0)),
            ],
            out_specs=pl.BlockSpec((tile_b, 1), lambda i: (i, 0)),
        ),
        compiler_params=pltpu.CompilerParams(
            dimension_semantics=("parallel",),
            vmem_limit_bytes=32 * 1024 * 1024,
        ),
    )(logit, target)

    loss = out[:B, 0]  # (B,)
    if reduce:
        return loss.mean()
    return loss


def _focal_loss_ref(logit, target, gamma=GAMMA):
    """Pure-JAX reference mirroring the PyTorch forward exactly (2-D, reduce=False)."""
    logit = logit.astype(jnp.float32)
    target = target.astype(jnp.float32)
    max_val = jnp.maximum(-logit, 0.0)                       # (-logit).clamp(min=0)
    loss = logit - logit * target + max_val + jnp.log(
        jnp.exp(-max_val) + jnp.exp(-logit - max_val))
    invprobs = jax.nn.log_sigmoid(-logit * (target * 2.0 - 1.0))
    loss = jnp.exp(invprobs * gamma) * loss
    return loss.sum(axis=1)


if __name__ == "__main__":
    key = jax.random.PRNGKey(0)

    # Case 1: hard {0,1} targets, tile-aligned batch.
    k1, k2, k3, k4 = jax.random.split(key, 4)
    B, N = 16, 128
    logit = jax.random.normal(k1, (B, N), dtype=jnp.float32) * 2.0
    target = (jax.random.uniform(k2, (B, N)) > 0.5).astype(jnp.float32)
    out = jax.block_until_ready(focal_loss(logit, target))
    ref = _focal_loss_ref(logit, target)
    assert out.shape == (B,)
    assert jnp.allclose(out, ref, rtol=1e-5, atol=1e-4), (out, ref)

    # Case 2: soft bf16 targets, batch not a multiple of the tile (exercises padding
    # and the in-kernel dtype cast).
    B2, N2 = 10, 256
    logit2 = jax.random.normal(k3, (B2, N2), dtype=jnp.float32)
    target2 = jax.random.uniform(k4, (B2, N2)).astype(jnp.bfloat16)
    out2 = jax.block_until_ready(focal_loss(logit2, target2))
    ref2 = _focal_loss_ref(logit2, target2)
    assert out2.shape == (B2,)
    assert jnp.allclose(out2, ref2, rtol=1e-5, atol=1e-4), (out2, ref2)

    print("KERNEL_OK")
</pallas_src>

<mosaic_0001>
module attributes {stable_mosaic.version = 11 : i64} {
  func.func @_focal_loss_kernel(%arg0: i32, %arg1: memref<8x128xf32, #tpu.memory_space<vmem>>, %arg2: memref<8x128xf32, #tpu.memory_space<vmem>>, %arg3: memref<8x1xf32, #tpu.memory_space<vmem>>) attributes {dimension_semantics = [#tpu.dimension_semantics<parallel>], iteration_bounds = array<i64: 2>, scalar_prefetch = 0 : i64, scratch_operands = 0 : i64, tpu.core_type = #tpu.core_type<tc>, window_params = [{transform_indices = @transform_0, window_bounds = array<i64: 8, 128>}, {transform_indices = @transform_1, window_bounds = array<i64: 8, 128>}, {transform_indices = @transform_2, window_bounds = array<i64: 8, 1>}]} {
    %c0 = arith.constant 0 : index
    %c0_0 = arith.constant 0 : index
    %0 = vector.load %arg1[%c0, %c0_0] : memref<8x128xf32, #tpu.memory_space<vmem>>, vector<8x128xf32>
    %c0_1 = arith.constant 0 : index
    %c0_2 = arith.constant 0 : index
    %1 = vector.load %arg2[%c0_1, %c0_2] : memref<8x128xf32, #tpu.memory_space<vmem>>, vector<8x128xf32>
    %2 = math.absf %0 : vector<8x128xf32>
    %cst = arith.constant 0.000000e+00 : f32
    %3 = vector.broadcast %cst : f32 to vector<8x128xf32>
    %4 = arith.subf %3, %2 : vector<8x128xf32>
    %5 = math.exp %4 : vector<8x128xf32>
    %6 = arith.mulf %0, %1 : vector<8x128xf32>
    %7 = arith.subf %0, %6 : vector<8x128xf32>
    %cst_3 = arith.constant 0.000000e+00 : f32
    %8 = vector.broadcast %cst_3 : f32 to vector<8x128xf32>
    %9 = arith.subf %8, %0 : vector<8x128xf32>
    %cst_4 = arith.constant 0.000000e+00 : f32
    %10 = vector.broadcast %cst_4 : f32 to vector<8x128xf32>
    %11 = arith.maximumf %9, %10 : vector<8x128xf32>
    %12 = arith.addf %7, %11 : vector<8x128xf32>
    %cst_5 = arith.constant 1.000000e+00 : f32
    %13 = vector.broadcast %cst_5 : f32 to vector<8x128xf32>
    %14 = arith.addf %13, %5 : vector<8x128xf32>
    %15 = math.log %14 : vector<8x128xf32>
    %16 = arith.addf %12, %15 : vector<8x128xf32>
    %cst_6 = arith.constant 0.000000e+00 : f32
    %17 = vector.broadcast %cst_6 : f32 to vector<8x128xf32>
    %18 = arith.subf %17, %0 : vector<8x128xf32>
    %cst_7 = arith.constant 2.000000e+00 : f32
    %19 = vector.broadcast %cst_7 : f32 to vector<8x128xf32>
    %20 = arith.mulf %1, %19 : vector<8x128xf32>
    %cst_8 = arith.constant 1.000000e+00 : f32
    %21 = vector.broadcast %cst_8 : f32 to vector<8x128xf32>
    %22 = arith.subf %20, %21 : vector<8x128xf32>
    %23 = arith.mulf %18, %22 : vector<8x128xf32>
    %24 = math.absf %23 : vector<8x128xf32>
    %cst_9 = arith.constant 0.000000e+00 : f32
    %25 = vector.broadcast %cst_9 : f32 to vector<8x128xf32>
    %26 = arith.subf %25, %24 : vector<8x128xf32>
    %27 = math.exp %26 : vector<8x128xf32>
    %cst_10 = arith.constant 0.000000e+00 : f32
    %28 = vector.broadcast %cst_10 : f32 to vector<8x128xf32>
    %29 = arith.cmpf oge, %23, %28 : vector<8x128xf32>
    %cst_11 = arith.constant 1.000000e+00 : f32
    %30 = vector.broadcast %cst_11 : f32 to vector<8x128xf32>
    %31 = arith.select %29, %30, %27 : vector<8x128xi1>, vector<8x128xf32>
    %cst_12 = arith.constant 1.000000e+00 : f32
    %32 = vector.broadcast %cst_12 : f32 to vector<8x128xf32>
    %33 = arith.addf %32, %27 : vector<8x128xf32>
    %34 = tpu.reciprocal %33 : vector<8x128xf32> -> vector<8x128xf32>
    %35 = arith.mulf %31, %34 : vector<8x128xf32>
    %36 = arith.mulf %35, %35 : vector<8x128xf32>
    %37 = arith.mulf %36, %16 : vector<8x128xf32>
    %cst_13 = arith.constant dense<0.000000e+00> : vector<8xf32>
    %38 = vector.multi_reduction <add>, %37, %cst_13 [1] : vector<8x128xf32> to vector<8xf32>
    %39 = vector.shape_cast %38 : vector<8xf32> to vector<8x1xf32>
    %c0_14 = arith.constant 0 : index
    %c0_15 = arith.constant 0 : index
    %40 = vector.load %arg3[%c0_14, %c0_15] : memref<8x1xf32, #tpu.memory_space<vmem>>, vector<8x1xf32>
    tpu.vector_store %arg3[%c0_14, %c0_15], %39 {strides = array<i32>} : memref<8x1xf32, #tpu.memory_space<vmem>>, vector<8x1xf32>,
    return
  }
  func.func @transform_0(%arg0: i32) -> (i32, i32) {
    %c0_i32 = arith.constant 0 : i32
    %c0_i32_0 = arith.constant 0 : i32
    return %arg0, %c0_i32 : i32, i32
  }
  func.func @transform_1(%arg0: i32) -> (i32, i32) {
    %c0_i32 = arith.constant 0 : i32
    %c0_i32_0 = arith.constant 0 : i32
    return %arg0, %c0_i32 : i32, i32
  }
  func.func @transform_2(%arg0: i32) -> (i32, i32) {
    %c0_i32 = arith.constant 0 : i32
    %c0_i32_0 = arith.constant 0 : i32
    return %arg0, %c0_i32 : i32, i32
  }
}

</mosaic_0001>

<bundles_post_ra>
// kernel: focal_loss.1
= control target key start
LH: loop header
LB: loop body
LE: loop exit
PB: predicated region body
PF: predicated region fallthrough
CT: control target
= control target key end

     0   :  { %7 = vsyncpa [#allocation3], 0  ;;  %s641_s0 = inlined_call_operand.hbm [shape: f32[16,128], index: 0, kind: input, shape index: {}]   ;;  %s642_s1 = inlined_call_operand.hbm [shape: f32[16,128], index: 1, kind: input, shape index: {}]   ;;  %s643_s2 = inlined_call_operand.vmem [shape: f32[16,1], index: 2, kind: output, shape index: {}]  }
   0x1   :  { %9 = vsyncpa [#allocation3 + $0x1], 0 }
   0x2   :  { %10 = vsyncpa [#allocation5], 0 }
   0x3   :  { %12 = vsyncpa [#allocation5 + $0x1], 0  ;;  %s515_s9 = smov 0   ;;  %s517_s10 = smov 0  }
   0x4   :  { %s519_s11 = smov 0   ;;  %s521_s12 = smov 0  }
   0x5 LB: > { %s534_s13 = sadd.s32 4294967295, %s498_s12   ;;  %s537_s14 = sadd.s32 1, %s498_s12   ;;  %s498_s12 = sphi %s521_s12, %s651_s12   ;;  %s494_s11 = sphi %s519_s11, %s650_s11   ;;  %s490_s10 = sphi %s517_s10, %s649_s10   ;;  %s486_s9 = sphi %s515_s9, %s648_s9  }
   0x6   : > { %s22_s15 = ssub.s32 %s498_s12, %s537_s14  ;;  %s25_s16 = sadd.s32 1, %s494_s11 }
   0x7   : > { %p23_p0 = scmp.eq.s32.totalorder %s22_s15, 0  ;;  %p32_p1 = scmp.ne.s32.totalorder %s494_s11, %s490_s10 }
   0x8   : > { %p33_p2 = scmp.eq.s32.totalorder %s498_s12, 0  ;;  %p38_p3 = scmp.ne.s32.totalorder %s490_s10, %s486_s9 }
   0x9   : > { %s547_s17 = scalar_select %p23_p0, %s494_s11, %s25_s16  }
   0xa   : > { %p549_p4 = por %p33_p2, %p32_p1  ;;  %p39_p5 = scmp.eq.s32.totalorder %s534_s13, 0 }
   0xb   : > { %p359_p6 = scmp.lt.s32.totalorder %s498_s12, 2  ;;  %s560_s20 = sand.u32 1, %s494_s11  }
   0xc   : > { %p555_p7 = por %p39_p5, %p38_p3  ;;  %s337_s21 = sshll.u32 %s560_s20, 3 }
   0xd   : > { %s338_s22 = sshll.u32 %s498_s12, 3  ;;  %s118_s26 = scalar_lea.vmem [#allocation2], %s337_s21 }
   0xe   : > { %s122_s25 = scalar_lea.hbm %s641_s0, %s338_s22  ;;  %s126_s27 = sshll.u32 %s118_s26, 4  ;;  %s127_s27 = int_to_ptr.vmem [resolvable:$true] %s126_s27 }
   0xf   : > { %s124_s28 = sshll.u32 %s122_s25, 4  ;;  %p569_p8 = pnand %p359_p6, %p549_p4  ;;  %s125_s28 = int_to_ptr.hbm [resolvable:$true] %s124_s28 }
  0x10   : > { %p341_p9 = scmp.ge.s32.totalorder %s498_s12, 1  ;;  %p150_p10 = scmp.lt.s32.totalorder %s498_s12, 3 }
  0x11   : > { %s115_s30 = scalar_lea.sflag [#allocation3], %s560_s20  ;;  %s400_s3 = sshra.s32 %s125_s28, 4  ;;  %s401_s3 = int_to_ptr.hbm [resolvable:$true] %s400_s3 }
  0x12   : > { %s402_s4 = scalar_lea.hbm %s401_s3, 8  ;;  %p404_p12 = pneg %p569_p8 }
  0x13   : > { %p403_p11 = scmp.ne.s32.totalorder %s401_s3, %s402_s4  ;;  %s407_s7 = scalar_lea.hbm %s641_s0, 16 }
  0x14   : > { %p408_p1 = scmp.lt.s32.totalorder %s401_s3, %s641_s0  ;;  %p409_p2 = scmp.lt.s32.totalorder %s407_s7, %s402_s4 }
  0x15   : > { %p405_p13 = pnand %p404_p12, %p403_p11 }
  0x16   : > { %p410_p3 = por %p409_p2, %p408_p1 }
  0x17   : > { %p406_p0 = pneg %p405_p13 }
  0x19   : > { %p411_p4 = pnand %p410_p3, %p406_p0 }
  0x1b   : > { %414 = shalt.err (!%p411_p4)
}
  0x1c   : > { %355 = dma.hbm_to_vmem [thread:$0]  (!%p569_p8), %s125_s28, 128, %s127_s27, %s115_s30  }
  0x1d   : > { %p593_p5 = pnand %p341_p9, %p150_p10  ;;  %s141_s23 = scalar_lea.hbm %s642_s1, %s338_s22 }
  0x1e   : > { %s137_s24 = scalar_lea.vmem [#allocation4], %s337_s21  ;;  %s143_s26 = sshll.u32 %s141_s23, 4  ;;  %s144_s26 = int_to_ptr.hbm [resolvable:$true] %s143_s26 }
  0x1f   : > { %s145_s25 = sshll.u32 %s137_s24, 4  ;;  %s134_s3 = scalar_lea.sflag [#allocation5], %s560_s20  ;;  %s146_s25 = int_to_ptr.vmem [resolvable:$true] %s145_s25 }
  0x20   : > { %s430_s4 = sshra.s32 %s144_s26, 4  ;;  %s437_s28 = scalar_lea.hbm %s642_s1, 16  ;;  %s431_s4 = int_to_ptr.hbm [resolvable:$true] %s430_s4 }
  0x21   : > { %s432_s5 = scalar_lea.hbm %s431_s4, 8  ;;  %p438_p11 = scmp.lt.s32.totalorder %s431_s4, %s642_s1 }
  0x22   : > { %p433_p6 = scmp.ne.s32.totalorder %s431_s4, %s432_s5  ;;  %p439_p13 = scmp.lt.s32.totalorder %s437_s28, %s432_s5 }
  0x24   : > { %p435_p9 = pnand %p433_p6, %p404_p12  ;;  %p440_p0 = por %p439_p13, %p438_p11 }
  0x26   : > { %p436_p10 = pneg %p435_p9 }
  0x28   : > { %p441_p1 = pnand %p440_p0, %p436_p10 }
  0x2a   : > { %444 = shalt.err (!%p441_p1)
}
  0x2b   : > { %358 = dma.hbm_to_vmem [thread:$0]  (!%p569_p8), %s144_s26, 128, %s146_s25, %s134_s3  }
  0x2c   : > { %154 = sbr.rel (%p593_p5) target bundleno = 214 (0xd6), region = 28  ;;  %s156_s20 = sand.u32 (!%p593_p5), 1, %s490_s10  }
  0x2d   : > { %s342_s21 = sshll.u32 (!%p593_p5), %s156_s20, 3  ;;  %s157_s6 = scalar_lea.sflag (!%p593_p5), [#allocation3], %s156_s20 }
  0x2e   : > { %s160_s7 = scalar_lea.vmem (!%p593_p5), [#allocation2], %s342_s21 }
  0x31   : > { %477 = dma.done.wait (%p555_p7), %s157_s6, 128  }
  0x32   : > { %479 = vsyncadd (%p555_p7), %s157_s6, 4294967168  ;;  %s167_s8 = scalar_lea.sflag [#allocation5], %s156_s20  ;;  %s170_s9 = scalar_lea.vmem [#allocation4], %s342_s21 }
  0x33   : > { %481 = dma.done.wait (%p555_p7), %s167_s8, 128  }
  0x34   : > { %483 = vsyncadd (%p555_p7), %s167_s8, 4294967168  ;;  %v200_v0 = vld [vmem:[%s160_s7] sm:$0xff]  ;;  %v201_v1 = vld [vmem:[%s170_s9] sm:$0xff]  ;;  %p196_p7 = scmp.lt.s32.totalorder %s534_s13, 1  ;;  %vm244_vm5 = vcmask 7168  }
  0x35   : > { %v202_v2 = vand.u32 2147483647, %v200_v0  ;;  %v208_v3 = vsub.f32 0.0, %v200_v0  ;;  %v215_v4 = vmul.f32 2.0, %v201_v1  ;;  %v206_v16 = vmul.f32 %v201_v1, %v200_v0 }
  0x36   : > { %s653_s13 = smov (!%p196_p7, %s534_s13), 1 }
  0x37   : > { %v345_v5 = vadd.f32 -1.0, %v215_v4  ;;  %v203_v6 = vsub.f32 0.0, %v202_v2  ;;  %v207_v19 = vsub.f32 %v200_v0, %v206_v16  ;;  %v209_v20 = vmax.f32 %v208_v3, 0.0  ;;  %s344_s19 = sshll.u32 %s653_s13, 3 }
  0x38   : > { %s199_s16 = scalar_lea.vmem %s643_s2, %s344_s19 }
  0x39   : > { %v217_v7 = vmul.f32 %v345_v5, %v208_v3  ;;  %v204_v9 = vmul.f32 1.442695, %v203_v6  ;;  %v210_v27 = vadd.f32 %v209_v20, %v207_v19 }
  0x3b   : > { %v218_v8 = vand.u32 2147483647, %v217_v7  ;;  %392 = vpow2.f32 %v204_v9  ;;  %vm222_vm2 = vcmp.ge.f32.partialorder %v217_v7, 0.0 }
  0x3d   : > { %v219_v10 = vsub.f32 0.0, %v218_v8 }
  0x3f   : > { %v220_v11 = vmul.f32 1.442695, %v219_v10 }
  0x41   : > { %394 = vpow2.f32 %v220_v11  ;;  %v393_v12 = vpop.eup %392 }
  0x42   : > { %v211_v15 = vadd.f32 1.0, %v393_v12 }
  0x47   : > { %v395_v13 = vpop.eup %394 }
  0x48   : > { %v224_v14 = vadd.f32 1.0, %v395_v13  ;;  %v223_v30 = vsel %vm222_vm2, 1.0, %v395_v13 }
  0x4a   : > { %396 = vrcp.f32 %v224_v14  ;;  %v236_v21 = vand.u32 2147483648, %v224_v14  ;;  %vm230_vm0 = vweird.f32 %v224_v14  ;;  %v234_v23 = vand.u32 2147483647, %v224_v14 }
  0x4b   : > { %398 = vlog2.f32 %v211_v15 }
  0x4c   : > { %v237_v26 = vor.u32 1.1754944e-38, %v236_v21  ;;  %vm235_vm4 = vcmp.eq.f32.partialorder %v234_v23, 8.507059e+37 }
  0x50   : > { %v397_v17 = vpop.eup %396 }
  0x51   : > { %v226_v18 = vmul.f32 %v397_v17, %v224_v14  ;;  %vm231_vm1 = vweird.f32 %v397_v17  ;;  %v399_v24 = vpop.eup %398 }
  0x52   : > { %vm232_vm3 = vmor %vm230_vm0, %vm231_vm1  ;;  %v213_v28 = vmul.f32 0.6931472, %v399_v24 }
  0x53   : > { %v227_v22 = vsub.f32 1.0, %v226_v18 }
  0x54   : > { %v214_v33 = vadd.f32 %v213_v28, %v210_v27 }
  0x55   : > { %v228_v25 = vmul.f32 %v397_v17, %v227_v22 }
  0x57   : > { %v229_v29 = vadd.f32 %v397_v17, %v228_v25 }
  0x59   : > { %v233_v31 = vsel %vm232_vm3, %v397_v17, %v229_v29 }
  0x5a   : > { %v238_v32 = vsel %vm235_vm4, %v237_v26, %v233_v31 }
  0x5b   : > { %v239_v34 = vmul.f32 %v238_v32, %v223_v30 }
  0x5d   : > { %v240_v35 = vmul.f32 %v239_v34, %v239_v34 }
  0x5f   : > { %v241_v36 = vmul.f32 %v240_v35, %v214_v33 }
  0x61   : > { %242 = vadd.xlane.f32.xlu0 %v241_v36 }
  0xd4   : > { %v243_v37 = vpop.xlane.xlu0 %242 }
  0xd5   : > { %245 = vst.msk [vmem:[%s199_s16] sm:$0xff] %vm244_vm5, %v243_v37 }
  0xd6 PF: > { %p15_p8 = scmp.ge.s32.totalorder %s537_s14, 4   ;;  %s648_s9 = smov %s490_s10 }
  0xd7   : > { %s649_s10 = smov %s494_s11  ;;  %s650_s11 = smov %s547_s17 }
  0xd8   : > { %s651_s12 = smov %s537_s14  ;;  %17 = sbr.rel (!%p15_p8) target bundleno = 5 (0x5), region = 81 }
  0xdd   :  { %265 = vsyncpa [#allocation3], 1 }
  0xde   :  { %267 = vsyncpa [#allocation3 + $0x1], 1 }
  0xdf   :  { %268 = vsyncpa [#allocation5], 1 }
  0xe0   :  { %270 = vsyncpa [#allocation5 + $0x1], 1 }

</bundles_post_ra>
